<compile_context>
chip_gen: v6e
topology: v6e:2x2x1
jax: 0.10.0
libtpu: 0.0.40
codegen_flags: <defaults>
</compile_context>

<pallas_src>
import math

import jax
import jax.numpy as jnp
from jax.experimental import pallas as pl
from jax.experimental.pallas import tpu as pltpu


LOG_STD_MAX = 2.0
LOG_STD_MIN = -20.0
_LOG_2PI = math.log(2.0 * math.pi)
_LOG_2 = math.log(2.0)


def _actor_kernel(state_ref, eps_ref,
                  w1_ref, b1_ref, w2_ref, b2_ref,
                  wh_ref, bh_ref,
                  a_ref, logp_ref):
    # All activations are (features, B_tile): batch on the lane axis.
    x = state_ref[...]                       # (S,  Bt)
    eps = eps_ref[...]                       # (A,  Bt)
    A = eps.shape[0]

    # a_net: Linear -> ReLU -> Linear -> ReLU   (h_acti = o_acti = ReLU)
    h1 = jnp.dot(w1_ref[...], x, preferred_element_type=jnp.float32) + b1_ref[...]
    h1 = jnp.maximum(h1, 0.0)                # (H1, Bt)
    h2 = jnp.dot(w2_ref[...], h1, preferred_element_type=jnp.float32) + b2_ref[...]
    h2 = jnp.maximum(h2, 0.0)                # (H2, Bt)

    # Fused mu / log_std head: one (2A, H) matmul, sliced on an 8-aligned
    # sublane boundary afterwards (A is a multiple of 8 -> slice is a view).
    heads = jnp.dot(wh_ref[...], h2, preferred_element_type=jnp.float32) + bh_ref[...]
    mu = heads[:A, :]                        # (A, Bt)
    log_std = jnp.clip(heads[A:, :], LOG_STD_MIN, LOG_STD_MAX)
    std = jnp.exp(log_std)                   # EUP

    # Reparameterized sample (rsample): u = mu + std * eps,  eps ~ N(0, 1)
    u = mu + std * eps
    a_ref[...] = jnp.tanh(u).astype(a_ref.dtype)   # EUP, lane-dense store

    # Normal(mu, std).log_prob(u): (u - mu) == std * eps exactly, so the
    # quadratic term simplifies to -0.5 * eps**2 (no divide).
    log_prob = -0.5 * (eps * eps) - log_std - 0.5 * _LOG_2PI

    # tanh correction: 2 * (log 2 - u - softplus(-2u))   (numerically stable)
    corr = 2.0 * (_LOG_2 - u - jax.nn.softplus(-2.0 * u))

    # Sum over the action (sublane) axis (XLU) -> lane-dense (1, Bt) store.
    logp_ref[...] = jnp.sum(log_prob - corr, axis=0,
                            keepdims=True).astype(logp_ref.dtype)


def actor_forward(state, eps, params, *, max_block_b=512):
    """Pallas-backed Actor forward. Returns (a, logp_pi_a) in (B, ...) layout.

    params = (w1, b1, w2, b2, w_head, b_head) with PyTorch-native layouts:
      w*: (out_features, in_features), b*: (out_features, 1);
      w_head / b_head are the mu|log_std heads concatenated along out_features.
    """
    w1, b1, w2, b2, wh, bh = params
    B, S = state.shape
    A = eps.shape[1]

    # Adaptive lane tile: one tile for small batches, up to max_block_b lanes
    # per tile for large batches.  Always a multiple of 128 (lane width).
    b_rounded = ((B + 127) // 128) * 128
    block_b = min(max_block_b, b_rounded)
    n_tiles = pl.cdiv(B, block_b)
    Bp = n_tiles * block_b

    # Transpose so batch is on the lane axis; pad lanes only when needed.
    state_t = state.T.astype(jnp.float32)          # (S, B)
    eps_t = eps.T.astype(jnp.float32)              # (A, B)
    if Bp != B:
        state_t = jnp.pad(state_t, ((0, 0), (0, Bp - B)))
        eps_t = jnp.pad(eps_t, ((0, 0), (0, Bp - B)))

    def full(arr):
        # Weight / bias blocks: whole array, constant index_map -> DMA'd once
        # and VMEM-resident across all grid steps.
        return pl.BlockSpec(arr.shape, lambda i: (0,) * arr.ndim)

    a_t, logp_t = pl.pallas_call(
        _actor_kernel,
        out_shape=(jax.ShapeDtypeStruct((A, Bp), jnp.float32),
                   jax.ShapeDtypeStruct((1, Bp), jnp.float32)),
        grid=(n_tiles,),
        in_specs=[pl.BlockSpec((S, block_b), lambda i: (0, i)),   # state tile
                  pl.BlockSpec((A, block_b), lambda i: (0, i)),   # eps tile
                  full(w1), full(b1), full(w2), full(b2),
                  full(wh), full(bh)],
        out_specs=(pl.BlockSpec((A, block_b), lambda i: (0, i)),
                   pl.BlockSpec((1, block_b), lambda i: (0, i))),
        compiler_params=pltpu.CompilerParams(
            dimension_semantics=("parallel",)),   # megacore batch split on v7x
    )(state_t, eps_t, w1, b1, w2, b2, wh, bh)

    # Strip padding, return batch-major results.
    a = a_t[:, :B].T            # (B, A)
    logp = logp_t[:, :B].T      # (B, 1)
    return a, logp


def init_linear(key, in_dim, out_dim):
    """Deterministic PyTorch-style nn.Linear init (uniform +- 1/sqrt(fan_in)).

    Weights stored in PyTorch-native (out, in) layout, biases as (out, 1).
    """
    kw, kb = jax.random.split(key)
    bound = 1.0 / math.sqrt(in_dim)
    w = jax.random.uniform(kw, (out_dim, in_dim), jnp.float32, -bound, bound)
    b = jax.random.uniform(kb, (out_dim, 1), jnp.float32, -bound, bound)
    return w, b


if __name__ == "__main__":
    # Small shapes consistent with Actor(state_dim, action_dim, hid_shape)
    state_dim = 16
    action_dim = 8
    hid_shape = (32, 32)

    root = jax.random.PRNGKey(0)
    k1, k2, k3, k4, k_data = jax.random.split(root, 5)

    w1, b1 = init_linear(k1, state_dim, hid_shape[0])
    w2, b2 = init_linear(k2, hid_shape[0], hid_shape[1])
    wmu, bmu = init_linear(k3, hid_shape[1], action_dim)
    wls, bls = init_linear(k4, hid_shape[1], action_dim)

    # Fused head parameters (mu rows first, then log_std rows).
    wh = jnp.concatenate([wmu, wls], axis=0)   # (2A, H)
    bh = jnp.concatenate([bmu, bls], axis=0)   # (2A, 1)
    params = (w1, b1, w2, b2, wh, bh)

    # Pure-JAX reference (original, un-simplified math, batch-major layout).
    def ref(state, eps):
        h1 = jnp.maximum(state @ w1.T + b1.T, 0.0)
        h2 = jnp.maximum(h1 @ w2.T + b2.T, 0.0)
        mu = h2 @ wmu.T + bmu.T
        log_std = jnp.clip(h2 @ wls.T + bls.T, LOG_STD_MIN, LOG_STD_MAX)
        std = jnp.exp(log_std)
        u = mu + std * eps
        a = jnp.tanh(u)
        lp = (-((u - mu) ** 2) / (2 * std * std) - log_std
              - 0.5 * jnp.log(2 * jnp.pi))
        corr = 2.0 * (jnp.log(2.0) - u - jax.nn.softplus(-2.0 * u))
        return a, jnp.sum(lp - corr, axis=1, keepdims=True)

    # Case 1: tiny batch (single padded tile).
    B = 2
    ks, ke, k_data = jax.random.split(k_data, 3)
    state = jax.random.normal(ks, (B, state_dim), jnp.float32)
    eps = jax.random.normal(ke, (B, action_dim), jnp.float32)   # rsample noise
    a, logp = actor_forward(state, eps, params)
    jax.block_until_ready((a, logp))
    a_r, logp_r = ref(state, eps)
    assert a.shape == (B, action_dim) and logp.shape == (B, 1)
    assert jnp.allclose(a, a_r, atol=1e-5), "action mismatch (B=2)"
    assert jnp.allclose(logp, logp_r, atol=1e-4), "logp mismatch (B=2)"

    # Case 2: non-multiple batch, multi-tile path (exercises grid + padding).
    B = 1300
    ks, ke = jax.random.split(k_data)
    state = jax.random.normal(ks, (B, state_dim), jnp.float32)
    eps = jax.random.normal(ke, (B, action_dim), jnp.float32)
    a, logp = actor_forward(state, eps, params)
    jax.block_until_ready((a, logp))
    a_r, logp_r = ref(state, eps)
    assert a.shape == (B, action_dim) and logp.shape == (B, 1)
    assert jnp.allclose(a, a_r, atol=1e-5), "action mismatch (B=1300)"
    assert jnp.allclose(logp, logp_r, atol=1e-4), "logp mismatch (B=1300)"

    print("KERNEL_OK")
</pallas_src>

<mosaic_0001>
module attributes {stable_mosaic.version = 11 : i64} {
  func.func @_actor_kernel(%arg0: i32, %arg1: memref<16x128xf32, #tpu.memory_space<vmem>>, %arg2: memref<8x128xf32, #tpu.memory_space<vmem>>, %arg3: memref<32x16xf32, #tpu.memory_space<vmem>>, %arg4: memref<32x1xf32, #tpu.memory_space<vmem>>, %arg5: memref<32x32xf32, #tpu.memory_space<vmem>>, %arg6: memref<32x1xf32, #tpu.memory_space<vmem>>, %arg7: memref<16x32xf32, #tpu.memory_space<vmem>>, %arg8: memref<16x1xf32, #tpu.memory_space<vmem>>, %arg9: memref<8x128xf32, #tpu.memory_space<vmem>>, %arg10: memref<1x128xf32, #tpu.memory_space<vmem>>) attributes {dimension_semantics = [#tpu.dimension_semantics<parallel>], iteration_bounds = array<i64: 1>, scalar_prefetch = 0 : i64, scratch_operands = 0 : i64, tpu.core_type = #tpu.core_type<tc>, window_params = [{transform_indices = @transform_0, window_bounds = array<i64: 16, 128>}, {transform_indices = @transform_1, window_bounds = array<i64: 8, 128>}, {pipeline_mode = #tpu.pipeline_mode<synchronous>, transform_indices = @transform_2, window_bounds = array<i64: 32, 16>}, {pipeline_mode = #tpu.pipeline_mode<synchronous>, transform_indices = @transform_3, window_bounds = array<i64: 32, 1>}, {pipeline_mode = #tpu.pipeline_mode<synchronous>, transform_indices = @transform_4, window_bounds = array<i64: 32, 32>}, {pipeline_mode = #tpu.pipeline_mode<synchronous>, transform_indices = @transform_5, window_bounds = array<i64: 32, 1>}, {pipeline_mode = #tpu.pipeline_mode<synchronous>, transform_indices = @transform_6, window_bounds = array<i64: 16, 32>}, {pipeline_mode = #tpu.pipeline_mode<synchronous>, transform_indices = @transform_7, window_bounds = array<i64: 16, 1>}, {transform_indices = @transform_8, window_bounds = array<i64: 8, 128>}, {transform_indices = @transform_9, window_bounds = array<i64: 1, 128>}]} {
    %c0 = arith.constant 0 : index
    %c0_0 = arith.constant 0 : index
    %0 = vector.load %arg1[%c0, %c0_0] : memref<16x128xf32, #tpu.memory_space<vmem>>, vector<16x128xf32>
    %c0_1 = arith.constant 0 : index
    %c0_2 = arith.constant 0 : index
    %1 = vector.load %arg2[%c0_1, %c0_2] : memref<8x128xf32, #tpu.memory_space<vmem>>, vector<8x128xf32>
    %c0_3 = arith.constant 0 : index
    %c0_4 = arith.constant 0 : index
    %2 = vector.load %arg3[%c0_3, %c0_4] : memref<32x16xf32, #tpu.memory_space<vmem>>, vector<32x16xf32>
    %cst = arith.constant dense<0.000000e+00> : vector<32x128xf32>
    %3 = tpu.matmul %2, %0, %cst {dimension_numbers = #tpu.dot_dimension_numbers<[1], [0], [0], [1], [0, 0, 1, 1], [], []>} : vector<32x16xf32>, vector<16x128xf32>, vector<32x128xf32> -> vector<32x128xf32>
    %c0_5 = arith.constant 0 : index
    %c0_6 = arith.constant 0 : index
    %4 = vector.load %arg4[%c0_5, %c0_6] : memref<32x1xf32, #tpu.memory_space<vmem>>, vector<32x1xf32>
    %5 = vector.broadcast %4 : vector<32x1xf32> to vector<32x128xf32>
    %6 = arith.addf %3, %5 : vector<32x128xf32>
    %cst_7 = arith.constant 0.000000e+00 : f32
    %7 = vector.broadcast %cst_7 : f32 to vector<32x128xf32>
    %8 = arith.maximumf %6, %7 : vector<32x128xf32>
    %c0_8 = arith.constant 0 : index
    %c0_9 = arith.constant 0 : index
    %9 = vector.load %arg5[%c0_8, %c0_9] : memref<32x32xf32, #tpu.memory_space<vmem>>, vector<32x32xf32>
    %cst_10 = arith.constant dense<0.000000e+00> : vector<32x128xf32>
    %10 = tpu.matmul %9, %8, %cst_10 {dimension_numbers = #tpu.dot_dimension_numbers<[1], [0], [0], [1], [0, 0, 1, 1], [], []>} : vector<32x32xf32>, vector<32x128xf32>, vector<32x128xf32> -> vector<32x128xf32>
    %c0_11 = arith.constant 0 : index
    %c0_12 = arith.constant 0 : index
    %11 = vector.load %arg6[%c0_11, %c0_12] : memref<32x1xf32, #tpu.memory_space<vmem>>, vector<32x1xf32>
    %12 = vector.broadcast %11 : vector<32x1xf32> to vector<32x128xf32>
    %13 = arith.addf %10, %12 : vector<32x128xf32>
    %cst_13 = arith.constant 0.000000e+00 : f32
    %14 = vector.broadcast %cst_13 : f32 to vector<32x128xf32>
    %15 = arith.maximumf %13, %14 : vector<32x128xf32>
    %c0_14 = arith.constant 0 : index
    %c0_15 = arith.constant 0 : index
    %16 = vector.load %arg7[%c0_14, %c0_15] : memref<16x32xf32, #tpu.memory_space<vmem>>, vector<16x32xf32>
    %cst_16 = arith.constant dense<0.000000e+00> : vector<16x128xf32>
    %17 = tpu.matmul %16, %15, %cst_16 {dimension_numbers = #tpu.dot_dimension_numbers<[1], [0], [0], [1], [0, 0, 1, 1], [], []>} : vector<16x32xf32>, vector<32x128xf32>, vector<16x128xf32> -> vector<16x128xf32>
    %c0_17 = arith.constant 0 : index
    %c0_18 = arith.constant 0 : index
    %18 = vector.load %arg8[%c0_17, %c0_18] : memref<16x1xf32, #tpu.memory_space<vmem>>, vector<16x1xf32>
    %19 = vector.broadcast %18 : vector<16x1xf32> to vector<16x128xf32>
    %20 = arith.addf %17, %19 : vector<16x128xf32>
    %21 = vector.extract_strided_slice %20 {offsets = [0, 0], sizes = [8, 128], strides = [1, 1]} : vector<16x128xf32> to vector<8x128xf32>
    %22 = vector.extract_strided_slice %20 {offsets = [8, 0], sizes = [8, 128], strides = [1, 1]} : vector<16x128xf32> to vector<8x128xf32>
    %cst_19 = arith.constant -2.000000e+01 : f32
    %cst_20 = arith.constant 2.000000e+00 : f32
    %23 = vector.broadcast %cst_19 : f32 to vector<8x128xf32>
    %24 = arith.maximumf %23, %22 : vector<8x128xf32>
    %25 = vector.broadcast %cst_20 : f32 to vector<8x128xf32>
    %26 = arith.minimumf %25, %24 : vector<8x128xf32>
    %27 = math.exp %26 : vector<8x128xf32>
    %28 = arith.mulf %27, %1 : vector<8x128xf32>
    %29 = arith.addf %21, %28 : vector<8x128xf32>
    %30 = math.tanh %29 : vector<8x128xf32>
    %c0_21 = arith.constant 0 : index
    %c0_22 = arith.constant 0 : index
    %31 = vector.load %arg9[%c0_21, %c0_22] : memref<8x128xf32, #tpu.memory_space<vmem>>, vector<8x128xf32>
    tpu.vector_store %arg9[%c0_21, %c0_22], %30 {strides = array<i32>} : memref<8x128xf32, #tpu.memory_space<vmem>>, vector<8x128xf32>,
    %32 = arith.mulf %1, %1 : vector<8x128xf32>
    %cst_23 = arith.constant -5.000000e-01 : f32
    %33 = vector.broadcast %cst_23 : f32 to vector<8x128xf32>
    %34 = arith.mulf %33, %32 : vector<8x128xf32>
    %35 = arith.subf %34, %26 : vector<8x128xf32>
    %cst_24 = arith.constant 0.918938517 : f32
    %36 = vector.broadcast %cst_24 : f32 to vector<8x128xf32>
    %37 = arith.subf %35, %36 : vector<8x128xf32>
    %cst_25 = arith.constant 0.693147182 : f32
    %38 = vector.broadcast %cst_25 : f32 to vector<8x128xf32>
    %39 = arith.subf %38, %29 : vector<8x128xf32>
    %cst_26 = arith.constant -2.000000e+00 : f32
    %40 = vector.broadcast %cst_26 : f32 to vector<8x128xf32>
    %41 = arith.mulf %40, %29 : vector<8x128xf32>
    %cst_27 = arith.constant 0.000000e+00 : f32
    %42 = vector.broadcast %cst_27 : f32 to vector<8x128xf32>
    %43 = arith.maximumf %41, %42 : vector<8x128xf32>
    %44 = vector.broadcast %cst_27 : f32 to vector<8x128xf32>
    %45 = arith.subf %41, %44 : vector<8x128xf32>
    %46 = arith.cmpf one, %45, %45 : vector<8x128xf32>
    %47 = vector.broadcast %cst_27 : f32 to vector<8x128xf32>
    %48 = arith.addf %41, %47 : vector<8x128xf32>
    %49 = math.absf %45 : vector<8x128xf32>
    %cst_28 = arith.constant 0.000000e+00 : f32
    %50 = vector.broadcast %cst_28 : f32 to vector<8x128xf32>
    %51 = arith.subf %50, %49 : vector<8x128xf32>
    %52 = math.exp %51 : vector<8x128xf32>
    %53 = math.log1p %52 : vector<8x128xf32>
    %54 = arith.addf %43, %53 : vector<8x128xf32>
    %55 = arith.select %46, %48, %54 : vector<8x128xi1>, vector<8x128xf32>
    %56 = arith.subf %39, %55 : vector<8x128xf32>
    %cst_29 = arith.constant 2.000000e+00 : f32
    %57 = vector.broadcast %cst_29 : f32 to vector<8x128xf32>
    %58 = arith.mulf %57, %56 : vector<8x128xf32>
    %59 = arith.subf %37, %58 : vector<8x128xf32>
    %cst_30 = arith.constant dense<0.000000e+00> : vector<128xf32>
    %60 = vector.multi_reduction <add>, %59, %cst_30 [0] : vector<8x128xf32> to vector<128xf32>
    %61 = vector.shape_cast %60 : vector<128xf32> to vector<1x128xf32>
    %c0_31 = arith.constant 0 : index
    %c0_32 = arith.constant 0 : index
    %62 = vector.load %arg10[%c0_31, %c0_32] : memref<1x128xf32, #tpu.memory_space<vmem>>, vector<1x128xf32>
    tpu.vector_store %arg10[%c0_31, %c0_32], %61 {strides = array<i32>} : memref<1x128xf32, #tpu.memory_space<vmem>>, vector<1x128xf32>,
    return
  }
  func.func @transform_0(%arg0: i32) -> (i32, i32) {
    %c0_i32 = arith.constant 0 : i32
    %c0_i32_0 = arith.constant 0 : i32
    return %c0_i32, %arg0 : i32, i32
  }
  func.func @transform_1(%arg0: i32) -> (i32, i32) {
    %c0_i32 = arith.constant 0 : i32
    %c0_i32_0 = arith.constant 0 : i32
    return %c0_i32, %arg0 : i32, i32
  }
  func.func @transform_2(%arg0: i32) -> (i32, i32) {
    %c0_i32 = arith.constant 0 : i32
    %c0_i32_0 = arith.constant 0 : i32
    %c0_i32_1 = arith.constant 0 : i32
    return %c0_i32, %c0_i32_0 : i32, i32
  }
  func.func @transform_3(%arg0: i32) -> (i32, i32) {
    %c0_i32 = arith.constant 0 : i32
    %c0_i32_0 = arith.constant 0 : i32
    %c0_i32_1 = arith.constant 0 : i32
    return %c0_i32, %c0_i32_0 : i32, i32
  }
  func.func @transform_4(%arg0: i32) -> (i32, i32) {
    %c0_i32 = arith.constant 0 : i32
    %c0_i32_0 = arith.constant 0 : i32
    %c0_i32_1 = arith.constant 0 : i32
    return %c0_i32, %c0_i32_0 : i32, i32
  }
  func.func @transform_5(%arg0: i32) -> (i32, i32) {
    %c0_i32 = arith.constant 0 : i32
    %c0_i32_0 = arith.constant 0 : i32
    %c0_i32_1 = arith.constant 0 : i32
    return %c0_i32, %c0_i32_0 : i32, i32
  }
  func.func @transform_6(%arg0: i32) -> (i32, i32) {
    %c0_i32 = arith.constant 0 : i32
    %c0_i32_0 = arith.constant 0 : i32
    %c0_i32_1 = arith.constant 0 : i32
    return %c0_i32, %c0_i32_0 : i32, i32
  }
  func.func @transform_7(%arg0: i32) -> (i32, i32) {
    %c0_i32 = arith.constant 0 : i32
    %c0_i32_0 = arith.constant 0 : i32
    %c0_i32_1 = arith.constant 0 : i32
    return %c0_i32, %c0_i32_0 : i32, i32
  }
  func.func @transform_8(%arg0: i32) -> (i32, i32) {
    %c0_i32 = arith.constant 0 : i32
    %c0_i32_0 = arith.constant 0 : i32
    return %c0_i32, %arg0 : i32, i32
  }
  func.func @transform_9(%arg0: i32) -> (i32, i32) {
    %c0_i32 = arith.constant 0 : i32
    %c0_i32_0 = arith.constant 0 : i32
    return %c0_i32, %arg0 : i32, i32
  }
}

</mosaic_0001>

<bundles_post_ra>
// kernel: tpu_custom_call.1
= control target key start
LH: loop header
LB: loop body
LE: loop exit
PB: predicated region body
PF: predicated region fallthrough
CT: control target
= control target key end

     0   :  { %15 = vsyncpa [#allocation3], 0  ;;  %vm64_vm0 = vcmask 130048   ;;  %v584_v4 = vmov 0   ;;  %s722_s0 = inlined_call_operand.vmem [shape: f32[16,128], index: 0, kind: input, shape index: {}]   ;;  %s723_s1 = inlined_call_operand.vmem [shape: f32[8,128], index: 1, kind: input, shape index: {}]   ;;  %s724_s2 = inlined_call_operand.vmem [shape: f32[32,16], index: 2, kind: input, shape index: {}]   ;;  %s725_s3 = inlined_call_operand.vmem [shape: f32[32,1], index: 3, kind: input, shape index: {}]   ;;  %s726_s4 = inlined_call_operand.vmem [shape: f32[32,32], index: 4, kind: input, shape index: {}]   ;;  %s727_s5 = inlined_call_operand.vmem [shape: f32[32,1], index: 5, kind: input, shape index: {}]   ;;  %s728_s6 = inlined_call_operand.vmem [shape: f32[16,32], index: 6, kind: input, shape index: {}]   ;;  %s729_s7 = inlined_call_operand.vmem [shape: f32[16,1], index: 7, kind: input, shape index: {}]   ;;  %s730_s8 = inlined_call_operand.hbm [shape: f32[8,128], index: 8, kind: output, shape index: {0}]   ;;  %s731_s9 = inlined_call_operand.hbm [shape: f32[1,128], index: 9, kind: output, shape index: {1}]  }
   0x1   :  { %v34_v0 = vld [vmem:[%s722_s0 + $0x8] sm:$0xff]  ;;  %v33_v1 = vld [vmem:[%s722_s0] sm:$0xff]  ;;  %530 = vset.pattern.permute.xlu0 %v584_v4  ;;  %v43_v5 = vld [vmem:[%s725_s3 + $0x18] sm:$0xff]  ;;  %531 = vset.pattern.permute.xlu1 %v584_v4 }
   0x2   :  { %v36_v2 = vld [vmem:[%s724_s2] sm:$0xff]  ;;  %492 = vmatprep.subr.mxu0 %v34_v0  ;;  %v37_v3 = vld [vmem:[%s724_s2 + $0x8] sm:$0xff]  ;;  %v38_v7 = vld [vmem:[%s724_s2 + $0x10] sm:$0xff]  ;;  %61 = vperm.xlu0 %530, %v43_v5  }
   0x3   :  { %496 = vmatprep.mubr.msk.f32.mxu0 %vm64_vm0, %v36_v2  ;;  %493 = vmatpush3.msra.mxu0 %v34_v0  ;;  %v41_v6 = vld [vmem:[%s725_s3 + $0x8] sm:$0xff]  ;;  %v42_v8 = vld [vmem:[%s725_s3 + $0x10] sm:$0xff] }
   0x4   :  { %494 = vmatprep.subr.mxu0 %v33_v1  ;;  %51 = vperm.xlu1 %531, %v41_v6  }
   0x5   :  { %495 = vmatpush3.msra.mxu0 %v33_v1 }
   0x6   :  { %497 = vmatmul.mubr.msk.f32.vlgmr.msra.gmra.mxu0 %vm64_vm0, %v37_v3 }
   0x7   :  { %16 = vsyncpa [#allocation5], 0  ;;  %499 = vmatprep.mubr.msk.f32.mxu0 %vm64_vm0, %v38_v7  ;;  %v39_v9 = vld [vmem:[%s724_s2 + $0x18] sm:$0xff]  ;;  %v40_v10 = vld [vmem:[%s725_s3] sm:$0xff]  ;;  %56 = vperm.xlu0 %530, %v42_v8   ;;  %vm194_vm1 = vcmask 261120  }
   0x8   :  { %v173_v11 = vld [vmem:[%s727_s5 + $0x18] sm:$0xff]  ;;  %46 = vperm.xlu1 %531, %v40_v10   ;;  %v172_v12 = vld [vmem:[%s727_s5 + $0x10] sm:$0xff]  ;;  %v171_v13 = vld [vmem:[%s727_s5 + $0x8] sm:$0xff] }
   0x9   :  { %v170_v14 = vld [vmem:[%s727_s5] sm:$0xff]  ;;  %v299_v15 = vld [vmem:[%s729_s7 + $0x8] sm:$0xff]  ;;  %v168_v35 = vld [vmem:[%s726_s4 + $0x10] sm:$0xff] }
   0xa   :  { %500 = vmatmul.mubr.msk.f32.gmra.mxu0 %vm64_vm0, %v39_v9  ;;  %v298_v16 = vld [vmem:[%s729_s7] sm:$0xff]  ;;  %v167_v34 = vld [vmem:[%s726_s4 + $0x8] sm:$0xff]  ;;  %v169_v36 = vld [vmem:[%s726_s4 + $0x18] sm:$0xff] }
   0xb   :  { %191 = vperm.xlu0 %530, %v173_v11   ;;  %v166_v17 = vld [vmem:[%s726_s4] sm:$0xff]  ;;  %v297_v54 = vld [vmem:[%s728_s6 + $0x8] sm:$0xff] }
   0xc   :  { %186 = vperm.xlu1 %531, %v172_v12   ;;  %510 = vmatprep.mubr.msk.f32.mxu1 %vm194_vm1, %v166_v17  ;;  %v296_v37 = vld [vmem:[%s728_s6] sm:$0xff]  ;;  %s585_s6 = smov [#allocation2]  }
   0xd   :  { %524 = vmatprep.mubr.msk.f32.mxu0 %vm194_vm1, %v296_v37  ;;  %v35_v0 = vld [vmem:[%s723_s1] sm:$0xff]  ;;  %s439_s27 = sshll.u32 %s585_s6, 4  ;;  %s440_s27 = int_to_ptr.vmem [resolvable:$true] %s439_s27 }
   0xe   :  { %s540_s28 = scalar_lea.vmem %s440_s27, 128  ;;  %p545_p1 = scmp.lt.s32.totalorder %s440_s27, %s440_s27 }
   0xf   :  { %181 = vperm.xlu0 %530, %v171_v13   ;;  %p541_p0 = scmp.ne.s32.totalorder %s440_s27, %s540_s28  ;;  %p546_p2 = scmp.lt.s32.totalorder %s540_s28, %s540_s28 }
  0x10   :  { %176 = vperm.xlu1 %531, %v170_v14  }
  0x11   :  { %p547_p3 = por %p546_p2, %p545_p1 }
  0x13   :  { %307 = vperm.xlu0 %530, %v299_v15   ;;  %p548_p4 = pnand %p547_p3, %p541_p0 }
  0x14   :  { %302 = vperm.xlu1 %531, %v298_v16  }
  0x7d   :  { %v62_v18 = vpop.permute.xlu0 %61 }
  0x7f   :  { %v52_v20 = vpop.permute.xlu1 %51 }
  0x82   :  { %v57_v24 = vpop.permute.xlu0 %56 }
  0x83   :  { %v47_v29 = vpop.permute.xlu1 %46 }
  0x86   :  { %v192_v38 = vpop.permute.xlu0 %191 }
  0x87   :  { %v187_v40 = vpop.permute.xlu1 %186 }
  0x8a   :  { %v182_v44 = vpop.permute.xlu0 %181 }
  0x8b   :  { %v177_v49 = vpop.permute.xlu1 %176 }
  0x8e   :  { %v308_v55 = vpop.permute.xlu0 %307 }
  0x8f   :  { %v303_v63 = vpop.permute.xlu1 %302 }
  0xc6   :  { %v498_v19 = vpop.f32.mrf.mxu0 }
  0xc7   :  { %v149_v26 = vadd.f32 %v498_v19, %v52_v20 }
  0xc8   :  { %v143_v21 = vpop.f32.mrf.mxu0 }
  0xc9   :  { %v144_v30 = vadd.f32 %v143_v21, %v47_v29  ;;  %v163_v32 = vmax.f32 %v149_v26, 0.0 }
  0xca   :  { %v501_v22 = vpop.f32.mrf.mxu0 }
  0xcb   :  { %v159_v23 = vadd.f32 %v501_v22, %v62_v18  ;;  %v162_v33 = vmax.f32 %v144_v30, 0.0 }
  0xcc   :  { %v153_v25 = vpop.f32.mrf.mxu0 }
  0xcd   :  { %v165_v27 = vmax.f32 %v159_v23, 0.0  ;;  %v154_v28 = vadd.f32 %v153_v25, %v57_v24 }
  0xcf   :  { %v164_v31 = vmax.f32 %v154_v28, 0.0  ;;  %502 = vmatprep.subr.mxu1 %v165_v27 }
  0xd0   :  { %503 = vmatpush3.msra.mxu1 %v165_v27 }
  0xd1   :  { %504 = vmatprep.subr.mxu1 %v164_v31 }
  0xd2   :  { %505 = vmatpush3.msra.mxu1 %v164_v31 }
  0xd3   :  { %506 = vmatprep.subr.mxu1 %v163_v32 }
  0xd4   :  { %507 = vmatpush3.msra.mxu1 %v163_v32 }
  0xd5   :  { %508 = vmatprep.subr.mxu1 %v162_v33 }
  0xd6   :  { %509 = vmatpush3.msra.mxu1 %v162_v33 }
  0xd7   :  { %511 = vmatmul.mubr.msk.f32.vlgmr.msra.gmra.mxu1 %vm194_vm1, %v167_v34 }
  0xd8   :  { %513 = vmatprep.mubr.msk.f32.mxu1 %vm194_vm1, %v168_v35 }
  0xdb   :  { %514 = vmatmul.mubr.msk.f32.gmra.mxu1 %vm194_vm1, %v169_v36 }
 0x197   :  { %v512_v39 = vpop.f32.mrf.mxu1 }
 0x198   :  { %v279_v46 = vadd.f32 %v512_v39, %v182_v44 }
 0x199   :  { %v273_v41 = vpop.f32.mrf.mxu1 }
 0x19a   :  { %v274_v50 = vadd.f32 %v273_v41, %v177_v49  ;;  %v293_v52 = vmax.f32 %v279_v46, 0.0 }
 0x19b   :  { %v515_v42 = vpop.f32.mrf.mxu1 }
 0x19c   :  { %v289_v43 = vadd.f32 %v515_v42, %v192_v38  ;;  %v292_v53 = vmax.f32 %v274_v50, 0.0 }
 0x19d   :  { %v283_v45 = vpop.f32.mrf.mxu1 }
 0x19e   :  { %v295_v47 = vmax.f32 %v289_v43, 0.0  ;;  %v284_v48 = vadd.f32 %v283_v45, %v187_v40 }
 0x1a0   :  { %v294_v51 = vmax.f32 %v284_v48, 0.0  ;;  %516 = vmatprep.subr.mxu0 %v295_v47 }
 0x1a1   :  { %517 = vmatpush3.msra.mxu0 %v295_v47 }
 0x1a2   :  { %518 = vmatprep.subr.mxu0 %v294_v51 }
 0x1a3   :  { %519 = vmatpush3.msra.mxu0 %v294_v51 }
 0x1a4   :  { %520 = vmatprep.subr.mxu0 %v293_v52 }
 0x1a5   :  { %521 = vmatpush3.msra.mxu0 %v293_v52 }
 0x1a6   :  { %522 = vmatprep.subr.mxu0 %v292_v53 }
 0x1a7   :  { %523 = vmatpush3.msra.mxu0 %v292_v53 }
 0x1a8   :  { %525 = vmatmul.mubr.msk.f32.vlgmr.msra.gmra.mxu0 %vm194_vm1, %v297_v54 }
 0x268   :  { %v526_v56 = vpop.f32.mrf.mxu0 }
 0x269   :  { %v388_v57 = vadd.f32 %v526_v56, %v308_v55 }
 0x26a   :  { %v382_v61 = vpop.f32.mrf.mxu0 }
 0x26b   :  { %v391_v58 = vmax.f32 %v388_v57, -20.0  ;;  %v383_v1 = vadd.f32 %v382_v61, %v303_v63 }
 0x26d   :  { %v392_v59 = vmin.f32 %v391_v58, 2.0 }
 0x26f   :  { %v393_v60 = vmul.f32 1.442695, %v392_v59 }
 0x271   :  { %532 = vpow2.f32 %v393_v60 }
 0x27e   :  { %v533_v62 = vpop.eup %532 }
 0x27f   :  { %v395_v2 = vmul.f32 %v533_v62, %v35_v0 }
 0x281   :  { %v396_v3 = vadd.f32 %v395_v2, %v383_v1 }
 0x283   :  { %v404_v4 = vmul.f32 -2.0, %v396_v3  ;;  %534 = vtanh.f32 %v396_v3 }
 0x285   :  { %v408_v5 = vand.u32 2147483647, %v404_v4 }
 0x287   :  { %v409_v6 = vsub.f32 0.0, %v408_v5 }
 0x289   :  { %v410_v7 = vmul.f32 1.442695, %v409_v6 }
 0x28b   :  { %536 = vpow2.f32 %v410_v7 }
 0x290   :  { %v535_v8 = vpop.eup %534 }
 0x291   :  { %398 = vst [vmem:[#allocation2] sm:$0xff] %v535_v8 }
 0x292   :  { %551 = shalt.err (!%p548_p4)
}
 0x293   :  { %442 = dma.vmem_to_hbm [thread:$0]  %s440_s27, 128, %s730_s8, [#allocation3]   ;;  %v399_v12 = vmul.f32 %v35_v0, %v35_v0  ;;  %v405_v19 = vmax.f32 %v404_v4, 0.0  ;;  %v403_v23 = vsub.f32 0.6931472, %v396_v3  ;;  %vm406_vm3 = vcmp.ne.f32.partialorder %v404_v4, %v404_v4 }
 0x294   :  { %s586_s8 = smov [#allocation4]  }
 0x295   :  { %v400_v16 = vmul.f32 -0.5, %v399_v12  ;;  %s449_s30 = sshll.u32 %s586_s8, 4  ;;  %s450_s30 = int_to_ptr.vmem [resolvable:$true] %s449_s30 }
 0x296   :  { %s560_s10 = scalar_lea.vmem %s450_s30, 16  ;;  %s564_s11 = scalar_lea.vmem %s450_s30, 32 }
 0x297   :  { %v401_v22 = vsub.f32 %v400_v16, %v392_v59  ;;  %p561_p5 = scmp.ne.s32.totalorder %s450_s30, %s560_s10  ;;  %p565_p6 = scmp.lt.s32.totalorder %s450_s30, %s450_s30 }
 0x298   :  { %v537_v9 = vpop.eup %536  ;;  %p566_p7 = scmp.lt.s32.totalorder %s564_s11, %s560_s10 }
 0x299   :  { %v412_v10 = vadd.f32 1.0, %v537_v9  ;;  %v415_v11 = vmul.f32 -0.5, %v537_v9  ;;  %v418_v14 = vand.u32 2147483647, %v537_v9  ;;  %v471_v26 = vadd.f32 -0.9189385, %v401_v22 }
 0x29a   :  { %p567_p8 = por %p566_p7, %p565_p6 }
 0x29b   :  { %538 = vlog2.f32 %v412_v10  ;;  %v416_v13 = vadd.f32 1.0, %v415_v11  ;;  %vm419_vm2 = vcmp.lt.f32.partialorder %v418_v14, 0.0004427343 }
 0x29c   :  { %p568_p9 = pnand %p567_p8, %p561_p5 }
 0x29d   :  { %v417_v18 = vmul.f32 %v537_v9, %v416_v13 }
 0x2a8   :  { %v539_v15 = vpop.eup %538 }
 0x2a9   :  { %v414_v17 = vmul.f32 0.6931472, %v539_v15 }
 0x2ab   :  { %v420_v20 = vsel %vm419_vm2, %v417_v18, %v414_v17 }
 0x2ac   :  { %v421_v21 = vadd.f32 %v420_v20, %v405_v19 }
 0x2ae   :  { %v422_v24 = vsel %vm406_vm3, %v404_v4, %v421_v21 }
 0x2af   :  { %v423_v25 = vsub.f32 %v403_v23, %v422_v24 }
 0x2b1   :  { %v424_v27 = vmul.f32 2.0, %v423_v25 }
 0x2b3   :  { %v425_v28 = vsub.f32 %v471_v26, %v424_v27 }
 0x2b5   :  { %v426_v29 = vrot.slane %v425_v28, 4 }
 0x2b7   :  { %v427_v30 = vadd.f32 %v426_v29, %v425_v28 }
 0x2b9   :  { %v428_v31 = vrot.slane %v427_v30, 2 }
 0x2bb   :  { %v429_v32 = vadd.f32 %v428_v31, %v427_v30 }
 0x2bd   :  { %v430_v33 = vrot.slane %v429_v32, 1 }
 0x2bf   :  { %v431_v34 = vadd.f32 %v430_v33, %v429_v32 }
 0x2c1   :  { %432 = vst [vmem:[#allocation4] sm:$0x1] %v431_v34 }
 0x2c2   :  { %571 = shalt.err (!%p568_p9)
}
 0x2c3   :  { %452 = dma.vmem_to_hbm [thread:$0]  %s450_s30, 16, %s731_s9, [#allocation5]  }
 0x2c4   :  { %580 = dma.done.wait [#allocation3], 128  }
 0x2c5   :  { %581 = vsyncadd [#allocation3], 4294967168 }
 0x2c6   :  { %582 = dma.done.wait [#allocation5], 16  }
 0x2c7   :  { %583 = vsyncadd [#allocation5], 4294967280 }
 0x2c8   :  { %459 = vsyncpa [#allocation3], 1 }
 0x2c9   :  { %460 = vsyncpa [#allocation5], 1 }

</bundles_post_ra>
